<compile_context>
chip_gen: v7x
topology: tpu7x:2x2x1
jax: 0.10.0
libtpu: 0.0.40
codegen_flags: <defaults>
</compile_context>

<pallas_src>
import functools

import jax
import jax.numpy as jnp
from jax.experimental import pallas as pl
from jax.experimental.pallas import tpu as pltpu

_LANE = 128          # vreg lane width  (feature-dim padding target)
_SUBLANE = 8         # vreg sublane width (batch padding target, grid-less path)
_NEG_PAD = -1e30     # finite large-negative pad for hidden biases (NOT -inf)
_TILE_B = 512        # batch tile for the gridded path
_GRID_THRESHOLD = 512  # use the grid-less path at or below this many rows


def _round_up(n, m):
    return ((n + m - 1) // m) * m


def _pad2(a, rows, cols, value=0.0):
    return jnp.pad(a, ((0, rows - a.shape[0]), (0, cols - a.shape[1])),
                   constant_values=value)


# ----------------------------- fused Pallas kernel -------------------------

def _make_fused_mlp_kernel(n_hidden, classify, matmul_dtype):
    """Kernel computing the whole MLP for one batch tile.

    Ref order: x, w1, b1, ..., wH, bH, w_out, b_out, o
    Weights are [in_pad, out_pad] in `matmul_dtype`; biases are [1, out_pad]
    f32 with padded lanes set to -1e30 (hidden) or 0 (output layer).
    """

    def kernel(*refs):
        x_ref, *wb, o_ref = refs
        u = x_ref[...].astype(jnp.float32)               # [TB, in_pad]

        for li in range(n_hidden):                       # trace-time unroll
            w = wb[2 * li][...]                          # matmul_dtype
            b = wb[2 * li + 1][...]                      # f32, read exactly once
            y = jnp.dot(u.astype(matmul_dtype), w,
                        preferred_element_type=jnp.float32) + b
            # mish(y) = y * tanh(softmax(y, axis=-1))
            # Padded lanes carry y = -1e30 from the bias pad:
            #   exp(y - m) underflows to exactly 0 -> softmax lane = 0
            #   tanh(0) = 0 -> y * 0 = 0   (no iota / mask / where needed)
            m = jnp.max(y, axis=-1, keepdims=True)
            e = jnp.exp(y - m)
            denom = jnp.sum(e, axis=-1, keepdims=True)
            sm = e * pl.reciprocal(denom, approx=True)   # EUP vrcp (free slot)
            u = y * jnp.tanh(sm)

        w = wb[-2][...]
        b = wb[-1][...]
        y = jnp.dot(u.astype(matmul_dtype), w,
                    preferred_element_type=jnp.float32) + b
        if classify:
            # sigmoid via a single EUP tanh (EUP is the first slot to saturate
            # here); mathematically identical to 1/(1+exp(-y))
            y = 0.5 * (jnp.tanh(0.5 * y) + 1.0)
        o_ref[...] = y.astype(o_ref.dtype)

    return kernel


# ------------------------------ model wrapper ------------------------------

def init_predictor_params(key, input_dim, hidden_dims, output_dim):
    """Deterministic init mimicking nn.Linear's uniform(-1/sqrt(in), 1/sqrt(in))."""
    dims = [input_dim] + list(hidden_dims)
    params = {"hidden": [], "out": None}
    for i in range(len(dims) - 1):
        key, kw, kb = jax.random.split(key, 3)
        bound = 1.0 / jnp.sqrt(jnp.float32(dims[i]))
        w = jax.random.uniform(kw, (dims[i], dims[i + 1]), jnp.float32, -bound, bound)
        b = jax.random.uniform(kb, (1, dims[i + 1]), jnp.float32, -bound, bound)
        params["hidden"].append((w, b))
    key, kw, kb = jax.random.split(key, 3)
    bound = 1.0 / jnp.sqrt(jnp.float32(dims[-1]))
    w = jax.random.uniform(kw, (dims[-1], output_dim), jnp.float32, -bound, bound)
    b = jax.random.uniform(kb, (1, output_dim), jnp.float32, -bound, bound)
    params["out"] = (w, b)
    return params


@functools.partial(jax.jit, static_argnames=("classify", "matmul_dtype_name"))
def predictor_forward(params, u, classify=True, matmul_dtype_name="bfloat16"):
    """Fused Predictor forward.  dropout p=0 -> identity (omitted)."""
    hidden = params["hidden"]
    w_out, b_out = params["out"]

    B, in_dim = u.shape
    out_dim = w_out.shape[1]
    matmul_dtype = jnp.bfloat16 if matmul_dtype_name == "bfloat16" else jnp.float32

    # ---- lane-dense padding of parameters (weights -> matmul dtype) --------
    widths = [in_dim] + [w.shape[1] for (w, _) in hidden]   # activation widths
    padded = [_round_up(d, _LANE) for d in widths]
    out_pad = _round_up(out_dim, _LANE)

    flat_params = []
    for li, (w, b) in enumerate(hidden):
        flat_params.append(_pad2(w, padded[li], padded[li + 1]).astype(matmul_dtype))
        # hidden bias: padded lanes get a large NEGATIVE FINITE value so the
        # in-kernel softmax zeroes them without any masking work
        flat_params.append(_pad2(b, 1, padded[li + 1], value=_NEG_PAD))
    flat_params.append(_pad2(w_out, padded[-1], out_pad).astype(matmul_dtype))
    flat_params.append(_pad2(b_out, 1, out_pad))            # output bias pad = 0

    kernel = _make_fused_mlp_kernel(len(hidden), classify, matmul_dtype)

    # ---- launch-shape selection -------------------------------------------
    use_grid = B > _GRID_THRESHOLD
    tile_b = _TILE_B if use_grid else _round_up(B, _SUBLANE)
    B_pad = _round_up(B, tile_b)
    x = jnp.pad(u, ((0, B_pad - B), (0, padded[0] - in_dim)))

    # ---- cost estimate + VMEM sizing (explicit, with headroom; v7x-safe) ---
    param_bytes = sum(int(p.size) * p.dtype.itemsize for p in flat_params)
    flops = 2 * B * sum(widths[i] * widths[i + 1] for i in range(len(hidden)))
    flops += 2 * B * widths[-1] * out_dim
    transcendentals = 2 * B * sum(widths[1:]) + (B * out_dim if classify else 0)
    bytes_accessed = (param_bytes + B_pad * padded[0] * 4 + B_pad * out_pad * 4)
    cost = pl.CostEstimate(flops=flops, transcendentals=transcendentals,
                           bytes_accessed=bytes_accessed)

    max_w = max(padded + [out_pad])
    vmem_need = (2 * tile_b * padded[0] * 4      # double-buffered input tile
                 + 2 * tile_b * out_pad * 4      # double-buffered output tile
                 + param_bytes                   # resident weights/biases
                 + 6 * tile_b * max_w * 4        # compiler scratch for activations
                 + (4 << 20))                    # headroom
    vmem_limit = int(min(max(vmem_need, 16 << 20), 48 << 20))

    if not use_grid:
        # Grid-less: every operand is a full-array VMEM block, kernel runs once.
        vmem = pl.BlockSpec(memory_space=pltpu.MemorySpace.VMEM)
        out_padded = pl.pallas_call(
            kernel,
            out_shape=jax.ShapeDtypeStruct((B_pad, out_pad), jnp.float32),
            in_specs=[vmem] * (1 + len(flat_params)),
            out_specs=vmem,
            compiler_params=pltpu.CompilerParams(vmem_limit_bytes=vmem_limit),
            cost_estimate=cost,
        )(x, *flat_params)
    else:
        # Batch-tiled grid: activation/output tiles pipelined; weights/biases
        # use a constant index_map (stay VMEM-resident, no re-DMA); the single
        # axis is "parallel" so v7x's 2 TensorCores split the work.
        n_tiles = B_pad // tile_b
        in_specs = [pl.BlockSpec((tile_b, padded[0]), lambda i: (i, 0))]
        for p in flat_params:
            in_specs.append(pl.BlockSpec(p.shape, lambda i: (0, 0)))
        out_spec = pl.BlockSpec((tile_b, out_pad), lambda i: (i, 0))
        out_padded = pl.pallas_call(
            kernel,
            out_shape=jax.ShapeDtypeStruct((B_pad, out_pad), jnp.float32),
            grid=(n_tiles,),
            in_specs=in_specs,
            out_specs=out_spec,
            compiler_params=pltpu.CompilerParams(
                dimension_semantics=("parallel",),
                vmem_limit_bytes=vmem_limit),
            cost_estimate=cost,
        )(x, *flat_params)

    return out_padded[:B, :out_dim]


# pure-JAX (f32) reference for correctness checks
def _reference_forward(params, u, classify=True):
    def ref_mish(x):
        return x * jnp.tanh(jax.nn.softmax(x, axis=-1))
    for (w, b) in params["hidden"]:
        u = ref_mish(u @ w + b)
    w, b = params["out"]
    u = u @ w + b
    if classify:
        u = jax.nn.sigmoid(u)
    return u


if __name__ == "__main__":
    key = jax.random.PRNGKey(0)
    kp, kx, kx2 = jax.random.split(key, 3)

    input_dim = 16
    hidden_dims = [32, 32]
    output_dim = 4
    params = init_predictor_params(kp, input_dim, hidden_dims, output_dim)

    # ---- small batch: exercises the grid-less single-invocation path -------
    batch = 8
    x = jax.random.normal(kx, (batch, input_dim), jnp.float32)
    out = jax.block_until_ready(predictor_forward(params, x, classify=True))
    ref = _reference_forward(params, x, classify=True)
    assert out.shape == (batch, output_dim)
    # tolerance covers bf16 matmul inputs + approx (EUP) softmax reciprocal
    assert jnp.allclose(out, ref, atol=2e-2, rtol=2e-2), "small-batch mismatch"

    # ---- larger batch: exercises the batch-tiled ("parallel") grid path ----
    batch_l = 1024
    xl = jax.random.normal(kx2, (batch_l, input_dim), jnp.float32)
    out_l = jax.block_until_ready(predictor_forward(params, xl, classify=True))
    ref_l = _reference_forward(params, xl, classify=True)
    assert out_l.shape == (batch_l, output_dim)
    assert jnp.allclose(out_l, ref_l, atol=2e-2, rtol=2e-2), "gridded mismatch"

    print("KERNEL_OK")
</pallas_src>

<mosaic_0001>
module attributes {stable_mosaic.version = 11 : i64} {
  func.func @kernel(%arg0: memref<8x128xf32, #tpu.memory_space<vmem>>, %arg1: memref<128x128xbf16, #tpu.memory_space<vmem>>, %arg2: memref<1x128xf32, #tpu.memory_space<vmem>>, %arg3: memref<128x128xbf16, #tpu.memory_space<vmem>>, %arg4: memref<1x128xf32, #tpu.memory_space<vmem>>, %arg5: memref<128x128xbf16, #tpu.memory_space<vmem>>, %arg6: memref<1x128xf32, #tpu.memory_space<vmem>>, %arg7: memref<8x128xf32, #tpu.memory_space<vmem>>) attributes {dimension_semantics = [], scalar_prefetch = 0 : i64, scratch_operands = 0 : i64, tpu.core_type = #tpu.core_type<tc>} {
    %c0 = arith.constant 0 : index
    %c0_0 = arith.constant 0 : index
    %0 = vector.load %arg0[%c0, %c0_0] : memref<8x128xf32, #tpu.memory_space<vmem>>, vector<8x128xf32>
    %c0_1 = arith.constant 0 : index
    %c0_2 = arith.constant 0 : index
    %1 = vector.load %arg1[%c0_1, %c0_2] : memref<128x128xbf16, #tpu.memory_space<vmem>>, vector<128x128xbf16>
    %c0_3 = arith.constant 0 : index
    %c0_4 = arith.constant 0 : index
    %2 = vector.load %arg2[%c0_3, %c0_4] : memref<1x128xf32, #tpu.memory_space<vmem>>, vector<1x128xf32>
    %3 = arith.truncf %0 : vector<8x128xf32> to vector<8x128xbf16>
    %cst = arith.constant dense<0.000000e+00> : vector<8x128xf32>
    %4 = tpu.matmul %3, %1, %cst {dimension_numbers = #tpu.dot_dimension_numbers<[1], [0], [0], [1], [0, 0, 1, 1], [], []>} : vector<8x128xbf16>, vector<128x128xbf16>, vector<8x128xf32> -> vector<8x128xf32>
    %5 = vector.broadcast %2 : vector<1x128xf32> to vector<8x128xf32>
    %6 = arith.addf %4, %5 : vector<8x128xf32>
    %cst_5 = arith.constant dense<0xFF800000> : vector<8xf32>
    %7 = vector.multi_reduction <maximumf>, %6, %cst_5 [1] : vector<8x128xf32> to vector<8xf32>
    %8 = vector.shape_cast %7 : vector<8xf32> to vector<8x1xf32>
    %9 = vector.broadcast %8 : vector<8x1xf32> to vector<8x128xf32>
    %10 = arith.subf %6, %9 : vector<8x128xf32>
    %11 = math.exp %10 : vector<8x128xf32>
    %cst_6 = arith.constant dense<0.000000e+00> : vector<8xf32>
    %12 = vector.multi_reduction <add>, %11, %cst_6 [1] : vector<8x128xf32> to vector<8xf32>
    %13 = vector.shape_cast %12 : vector<8xf32> to vector<8x1xf32>
    %14 = tpu.reciprocal %13 {approx = true} : vector<8x1xf32> -> vector<8x1xf32>
    %15 = vector.broadcast %14 : vector<8x1xf32> to vector<8x128xf32>
    %16 = arith.mulf %11, %15 : vector<8x128xf32>
    %17 = math.tanh %16 : vector<8x128xf32>
    %18 = arith.mulf %6, %17 : vector<8x128xf32>
    %c0_7 = arith.constant 0 : index
    %c0_8 = arith.constant 0 : index
    %19 = vector.load %arg3[%c0_7, %c0_8] : memref<128x128xbf16, #tpu.memory_space<vmem>>, vector<128x128xbf16>
    %c0_9 = arith.constant 0 : index
    %c0_10 = arith.constant 0 : index
    %20 = vector.load %arg4[%c0_9, %c0_10] : memref<1x128xf32, #tpu.memory_space<vmem>>, vector<1x128xf32>
    %21 = arith.truncf %18 : vector<8x128xf32> to vector<8x128xbf16>
    %cst_11 = arith.constant dense<0.000000e+00> : vector<8x128xf32>
    %22 = tpu.matmul %21, %19, %cst_11 {dimension_numbers = #tpu.dot_dimension_numbers<[1], [0], [0], [1], [0, 0, 1, 1], [], []>} : vector<8x128xbf16>, vector<128x128xbf16>, vector<8x128xf32> -> vector<8x128xf32>
    %23 = vector.broadcast %20 : vector<1x128xf32> to vector<8x128xf32>
    %24 = arith.addf %22, %23 : vector<8x128xf32>
    %cst_12 = arith.constant dense<0xFF800000> : vector<8xf32>
    %25 = vector.multi_reduction <maximumf>, %24, %cst_12 [1] : vector<8x128xf32> to vector<8xf32>
    %26 = vector.shape_cast %25 : vector<8xf32> to vector<8x1xf32>
    %27 = vector.broadcast %26 : vector<8x1xf32> to vector<8x128xf32>
    %28 = arith.subf %24, %27 : vector<8x128xf32>
    %29 = math.exp %28 : vector<8x128xf32>
    %cst_13 = arith.constant dense<0.000000e+00> : vector<8xf32>
    %30 = vector.multi_reduction <add>, %29, %cst_13 [1] : vector<8x128xf32> to vector<8xf32>
    %31 = vector.shape_cast %30 : vector<8xf32> to vector<8x1xf32>
    %32 = tpu.reciprocal %31 {approx = true} : vector<8x1xf32> -> vector<8x1xf32>
    %33 = vector.broadcast %32 : vector<8x1xf32> to vector<8x128xf32>
    %34 = arith.mulf %29, %33 : vector<8x128xf32>
    %35 = math.tanh %34 : vector<8x128xf32>
    %36 = arith.mulf %24, %35 : vector<8x128xf32>
    %c0_14 = arith.constant 0 : index
    %c0_15 = arith.constant 0 : index
    %37 = vector.load %arg5[%c0_14, %c0_15] : memref<128x128xbf16, #tpu.memory_space<vmem>>, vector<128x128xbf16>
    %c0_16 = arith.constant 0 : index
    %c0_17 = arith.constant 0 : index
    %38 = vector.load %arg6[%c0_16, %c0_17] : memref<1x128xf32, #tpu.memory_space<vmem>>, vector<1x128xf32>
    %39 = arith.truncf %36 : vector<8x128xf32> to vector<8x128xbf16>
    %cst_18 = arith.constant dense<0.000000e+00> : vector<8x128xf32>
    %40 = tpu.matmul %39, %37, %cst_18 {dimension_numbers = #tpu.dot_dimension_numbers<[1], [0], [0], [1], [0, 0, 1, 1], [], []>} : vector<8x128xbf16>, vector<128x128xbf16>, vector<8x128xf32> -> vector<8x128xf32>
    %41 = vector.broadcast %38 : vector<1x128xf32> to vector<8x128xf32>
    %42 = arith.addf %40, %41 : vector<8x128xf32>
    %cst_19 = arith.constant 5.000000e-01 : f32
    %43 = vector.broadcast %cst_19 : f32 to vector<8x128xf32>
    %44 = arith.mulf %43, %42 : vector<8x128xf32>
    %45 = math.tanh %44 : vector<8x128xf32>
    %cst_20 = arith.constant 1.000000e+00 : f32
    %46 = vector.broadcast %cst_20 : f32 to vector<8x128xf32>
    %47 = arith.addf %45, %46 : vector<8x128xf32>
    %cst_21 = arith.constant 5.000000e-01 : f32
    %48 = vector.broadcast %cst_21 : f32 to vector<8x128xf32>
    %49 = arith.mulf %48, %47 : vector<8x128xf32>
    %c0_22 = arith.constant 0 : index
    %c0_23 = arith.constant 0 : index
    %50 = vector.load %arg7[%c0_22, %c0_23] : memref<8x128xf32, #tpu.memory_space<vmem>>, vector<8x128xf32>
    tpu.vector_store %arg7[%c0_22, %c0_23], %49 {strides = array<i32>} : memref<8x128xf32, #tpu.memory_space<vmem>>, vector<8x128xf32>,
    return
  }
}

</mosaic_0001>

<bundles_post_ra>
// kernel: predictor_forward.1
= control target key start
LH: loop header
LB: loop body
LE: loop exit
PB: predicated region body
PF: predicated region fallthrough
CT: control target
= control target key end

     0   :  { %v549_v0 = vmov 0.0   ;;  %vm550_vm0 = vmmov 0   ;;  %s708_s1 = inlined_call_operand.vmem [shape: bf16[128,128], index: 1, kind: input, shape index: {}]   ;;  %s709_s0 = inlined_call_operand.vmem [shape: f32[8,128], index: 0, kind: input, shape index: {}]   ;;  %s710_s2 = inlined_call_operand.vmem [shape: f32[1,128], index: 2, kind: input, shape index: {}]   ;;  %s711_s3 = inlined_call_operand.vmem [shape: bf16[128,128], index: 3, kind: input, shape index: {}]   ;;  %s712_s4 = inlined_call_operand.vmem [shape: f32[1,128], index: 4, kind: input, shape index: {}]   ;;  %s713_s5 = inlined_call_operand.vmem [shape: bf16[128,128], index: 5, kind: input, shape index: {}]   ;;  %s714_s6 = inlined_call_operand.vmem [shape: f32[1,128], index: 6, kind: input, shape index: {}]   ;;  %s715_s7 = inlined_call_operand.vmem [shape: f32[8,128], index: 7, kind: output, shape index: {}]  }
   0x1   :  { %449 = vmatprep.subr.bf16.mxu0 %v549_v0  ;;  %v511_v1 = vld [vmem:[%s708_s1] sm:$0xff]   ;;  %465 = vmatprep.mubr.msk.bf16.mxu0 %vm550_vm0, %v549_v0  ;;  %v512_v2 = vld [vmem:[%s708_s1 + $0x8] sm:$0xff]   ;;  %v513_v3 = vld [vmem:[%s708_s1 + $0x10] sm:$0xff]  }
   0x2   :  { %469 = vmatprep.subr.bf16.mxu1 %v549_v0  ;;  %485 = vmatprep.mubr.msk.bf16.mxu1 %vm550_vm0, %v549_v0  ;;  %v514_v4 = vld [vmem:[%s708_s1 + $0x18] sm:$0xff]   ;;  %v515_v5 = vld [vmem:[%s708_s1 + $0x20] sm:$0xff]   ;;  %v516_v6 = vld [vmem:[%s708_s1 + $0x28] sm:$0xff]  }
   0x3   :  { %450 = vmatpush3.bf16.msra.mxu0 %v511_v1  ;;  %v517_v7 = vld [vmem:[%s708_s1 + $0x30] sm:$0xff]   ;;  %v518_v8 = vld [vmem:[%s708_s1 + $0x38] sm:$0xff]   ;;  %v27_v9 = vld [vmem:[%s709_s0] sm:$0xff] }
   0x4   :  { %451 = vmatprep.subr.bf16.mxu0 %v549_v0  ;;  %v45_v10 = vpack.c.bf16 %v27_v9, %v27_v9  ;;  %v395_v11 = vld [vmem:[%s710_s2] ss:$0 sm:$0xff]  ;;  %v520_v22 = vld [vmem:[%s711_s3 + $0x8] sm:$0xff]   ;;  %v521_v23 = vld [vmem:[%s711_s3 + $0x10] sm:$0xff]  }
   0x5   :  { %v519_v17 = vld [vmem:[%s711_s3] sm:$0xff]   ;;  %v522_v24 = vld [vmem:[%s711_s3 + $0x18] sm:$0xff]   ;;  %v524_v26 = vld [vmem:[%s711_s3 + $0x28] sm:$0xff]  }
   0x6   :  { %470 = vmatpush3.bf16.msra.mxu1 %v519_v17  ;;  %v523_v25 = vld [vmem:[%s711_s3 + $0x20] sm:$0xff]   ;;  %v525_v27 = vld [vmem:[%s711_s3 + $0x30] sm:$0xff]   ;;  %v526_v28 = vld [vmem:[%s711_s3 + $0x38] sm:$0xff]  }
   0x7   :  { %452 = vmatpush3.bf16.msra.mxu0 %v512_v2  ;;  %471 = vmatprep.subr.bf16.mxu1 %v549_v0  ;;  %v404_v35 = vld [vmem:[%s712_s4] ss:$0 sm:$0xff]  ;;  %v528_v46 = vld [vmem:[%s713_s5 + $0x8] sm:$0xff]   ;;  %v529_v47 = vld [vmem:[%s713_s5 + $0x10] sm:$0xff]  }
   0x8   :  { %453 = vmatprep.subr.bf16.mxu0 %v549_v0  ;;  %v527_v41 = vld [vmem:[%s713_s5] sm:$0xff]   ;;  %v530_v48 = vld [vmem:[%s713_s5 + $0x18] sm:$0xff]   ;;  %v532_v50 = vld [vmem:[%s713_s5 + $0x28] sm:$0xff]  }
   0x9   :  { %v531_v49 = vld [vmem:[%s713_s5 + $0x20] sm:$0xff]   ;;  %v533_v51 = vld [vmem:[%s713_s5 + $0x30] sm:$0xff]   ;;  %v534_v52 = vld [vmem:[%s713_s5 + $0x38] sm:$0xff]  }
   0xa   :  { %472 = vmatpush3.bf16.msra.mxu1 %v520_v22  ;;  %v413_v59 = vld [vmem:[%s714_s6] ss:$0 sm:$0xff] }
   0xb   :  { %454 = vmatpush3.bf16.msra.mxu0 %v513_v3  ;;  %473 = vmatprep.subr.bf16.mxu1 %v549_v0 }
   0xc   :  { %455 = vmatprep.subr.bf16.mxu0 %v549_v0 }
   0xe   :  { %474 = vmatpush3.bf16.msra.mxu1 %v521_v23 }
   0xf   :  { %456 = vmatpush3.bf16.msra.mxu0 %v514_v4  ;;  %475 = vmatprep.subr.bf16.mxu1 %v549_v0 }
  0x10   :  { %457 = vmatprep.subr.bf16.mxu0 %v549_v0 }
  0x12   :  { %476 = vmatpush3.bf16.msra.mxu1 %v522_v24 }
  0x13   :  { %458 = vmatpush3.bf16.msra.mxu0 %v515_v5  ;;  %477 = vmatprep.subr.bf16.mxu1 %v549_v0 }
  0x14   :  { %459 = vmatprep.subr.bf16.mxu0 %v549_v0 }
  0x16   :  { %478 = vmatpush3.bf16.msra.mxu1 %v523_v25 }
  0x17   :  { %460 = vmatpush3.bf16.msra.mxu0 %v516_v6  ;;  %479 = vmatprep.subr.bf16.mxu1 %v549_v0 }
  0x18   :  { %461 = vmatprep.subr.bf16.mxu0 %v549_v0 }
  0x1a   :  { %480 = vmatpush3.bf16.msra.mxu1 %v524_v26 }
  0x1b   :  { %462 = vmatpush3.bf16.msra.mxu0 %v517_v7  ;;  %481 = vmatprep.subr.bf16.mxu1 %v549_v0 }
  0x1c   :  { %463 = vmatprep.subr.bf16.mxu0 %v549_v0 }
  0x1e   :  { %482 = vmatpush3.bf16.msra.mxu1 %v525_v27 }
  0x1f   :  { %464 = vmatpush3.bf16.msra.mxu0 %v518_v8  ;;  %483 = vmatprep.subr.bf16.mxu1 %v549_v0 }
  0x20   :  { %489 = vmatprep.subr.bf16.mxu0 %v549_v0 }
  0x22   :  { %466 = vmatmul.mubr.bf16.vlgmr.msra.gmra.mrb[0].mxu0 %v45_v10  ;;  %484 = vmatpush3.bf16.msra.mxu1 %v526_v28 }
  0x23   :  { %505 = vmatprep.mubr.msk.bf16.mxu0 %vm550_vm0, %v549_v0  ;;  %490 = vmatpush3.bf16.msra.mxu0 %v527_v41 }
  0x24   :  { %491 = vmatprep.subr.bf16.mxu0 %v549_v0 }
  0x27   :  { %492 = vmatpush3.bf16.msra.mxu0 %v528_v46 }
  0x28   :  { %493 = vmatprep.subr.bf16.mxu0 %v549_v0 }
  0x2b   :  { %494 = vmatpush3.bf16.msra.mxu0 %v529_v47 }
  0x2c   :  { %495 = vmatprep.subr.bf16.mxu0 %v549_v0 }
  0x2f   :  { %496 = vmatpush3.bf16.msra.mxu0 %v530_v48 }
  0x30   :  { %497 = vmatprep.subr.bf16.mxu0 %v549_v0 }
  0x33   :  { %498 = vmatpush3.bf16.msra.mxu0 %v531_v49 }
  0x34   :  { %499 = vmatprep.subr.bf16.mxu0 %v549_v0 }
  0x37   :  { %500 = vmatpush3.bf16.msra.mxu0 %v532_v50 }
  0x38   :  { %501 = vmatprep.subr.bf16.mxu0 %v549_v0 }
  0x3b   :  { %502 = vmatpush3.bf16.msra.mxu0 %v533_v51 }
  0x3c   :  { %503 = vmatprep.subr.bf16.mxu0 %v549_v0 }
  0x3f   :  { %504 = vmatpush3.bf16.msra.mxu0 %v534_v52 }
  0xf5   :  { %v134_v12 = vpop.f32.mrb[0].mxu0 }
  0xf6   :  { %v135_v13 = vadd.f32 %v395_v11, %v134_v12  ;;  %v467_v14 = vpop.f32.mrb[1].mxu0 }
  0xf7   :  { %v137_v15 = vpop.f32.mrb[2].mxu0 }
  0xf8   :  { %140 = vmax.xlane.f32.xlu0 %v135_v13  ;;  %v468_v16 = vpop.f32.mrb[3].mxu0 }
 0x185   :  { %v141_v18 = vpop.xlane.xlu0 %140 }
 0x186   :  { %v142_v19 = vsub.f32 %v135_v13, %v141_v18 }
 0x188   :  { %v143_v20 = vmul.f32 1.442695, %v142_v19 }
 0x18a   :  { %535 = vpow2.f32 %v143_v20 }
 0x194   :  { %v536_v21 = vpop.eup %535 }
 0x195   :  { %145 = vadd.xlane.f32.xlu0 %v536_v21 }
 0x222   :  { %v146_v29 = vpop.xlane.xlu0 %145 }
 0x223   :  { %537 = vrcp.f32 %v146_v29 }
 0x22d   :  { %v538_v30 = vpop.eup %537 }
 0x22e   :  { %v148_v31 = vmul.f32 %v538_v30, %v536_v21 }
 0x230   :  { %539 = vtanh.f32 %v148_v31 }
 0x23a   :  { %v540_v32 = vpop.eup %539 }
 0x23b   :  { %v150_v33 = vmul.f32 %v540_v32, %v135_v13 }
 0x23d   :  { %v168_v34 = vpack.c.bf16 %v150_v33, %v150_v33 }
 0x23f   :  { %486 = vmatmul.mubr.bf16.vlgmr.msra.gmra.mrb[0].mxu1 %v168_v34 }
 0x312   :  { %v257_v36 = vpop.f32.mrb[0].mxu1 }
 0x313   :  { %v258_v37 = vadd.f32 %v404_v35, %v257_v36  ;;  %v487_v38 = vpop.f32.mrb[1].mxu1 }
 0x314   :  { %v260_v39 = vpop.f32.mrb[2].mxu1 }
 0x315   :  { %263 = vmax.xlane.f32.xlu1 %v258_v37  ;;  %v488_v40 = vpop.f32.mrb[3].mxu1 }
 0x3a2   :  { %v264_v42 = vpop.xlane.xlu1 %263 }
 0x3a3   :  { %v265_v43 = vsub.f32 %v258_v37, %v264_v42 }
 0x3a5   :  { %v266_v44 = vmul.f32 1.442695, %v265_v43 }
 0x3a7   :  { %541 = vpow2.f32 %v266_v44 }
 0x3b1   :  { %v542_v45 = vpop.eup %541 }
 0x3b2   :  { %268 = vadd.xlane.f32.xlu1 %v542_v45 }
 0x43f   :  { %v269_v53 = vpop.xlane.xlu1 %268 }
 0x440   :  { %543 = vrcp.f32 %v269_v53 }
 0x44a   :  { %v544_v54 = vpop.eup %543 }
 0x44b   :  { %v271_v55 = vmul.f32 %v544_v54, %v542_v45 }
 0x44d   :  { %545 = vtanh.f32 %v271_v55 }
 0x457   :  { %v546_v56 = vpop.eup %545 }
 0x458   :  { %v273_v57 = vmul.f32 %v546_v56, %v258_v37 }
 0x45a   :  { %v291_v58 = vpack.c.bf16 %v273_v57, %v273_v57 }
 0x45c   :  { %506 = vmatmul.mubr.bf16.vlgmr.msra.gmra.mrb[4].mxu0 %v291_v58 }
 0x52f   :  { %v380_v60 = vpop.f32.mrb[4].mxu0 }
 0x530   :  { %v381_v61 = vadd.f32 %v413_v59, %v380_v60  ;;  %v507_v62 = vpop.f32.mrb[5].mxu0 }
 0x531   :  { %v383_v63 = vpop.f32.mrb[6].mxu0 }
 0x532   :  { %v386_v1 = vmul.f32 0.5, %v381_v61  ;;  %v508_v0 = vpop.f32.mrb[7].mxu0 }
 0x534   :  { %547 = vtanh.f32 %v386_v1 }
 0x53e   :  { %v548_v2 = vpop.eup %547 }
 0x53f   :  { %v388_v3 = vadd.f32 1.0, %v548_v2 }
 0x541   :  { %v389_v4 = vmul.f32 0.5, %v388_v3 }
 0x543   :  { %390 = vst [vmem:[%s715_s7] sm:$0xff] %v389_v4 }

</bundles_post_ra>
